<compile_context>
chip_gen: v7x
topology: tpu7x:2x2x1
jax: 0.10.0
libtpu: 0.0.40
codegen_flags: <defaults>
</compile_context>

<pallas_src>
import jax
import jax.numpy as jnp
from jax.experimental import pallas as pl
from jax.experimental.pallas import tpu as pltpu

_LANE = 128
_MIB = 1024 * 1024


def _sublane(dtype) -> int:
    """Sublane packing factor: 8 rows for 32-bit, 16 for 16-bit, 32 for 8-bit."""
    bits = jnp.dtype(dtype).itemsize * 8
    return max(8, 256 // bits)


def _round_up(x: int, m: int) -> int:
    return ((x + m - 1) // m) * m


def _vmem_budget_bytes() -> tuple[int, int]:
    """(per-buffer tile budget, vmem_limit_bytes) derived from the chip's VMEM."""
    try:
        cap = int(pltpu.get_tpu_info().vmem_capacity_bytes)
    except Exception:
        cap = 64 * _MIB  # conservative: assume v7x's per-TC 64 MiB
    # 4 live buffers (double-buffered input + output).  8 MiB per buffer keeps
    # the working set at ~32 MiB: safe under v7x's 64 MiB physical VMEM and
    # comfortably inside v5e/v6e's 128 MiB; smaller chips scale proportionally.
    budget = min(8 * _MIB, max(1 * _MIB, cap // 8))
    headroom_cap = cap - 16 * _MIB if cap > 32 * _MIB else cap // 2
    limit = min(4 * budget + 8 * _MIB, headroom_cap)
    return budget, limit


def _pick_tile_rows(rows: int, cols: int, itemsize: int, sublane: int,
                    budget: int) -> int:
    """Largest sublane-aligned row-tile within the VMEM budget (cdiv grid)."""
    if rows <= sublane:
        return rows                       # full second-minor dim: always legal
    row_bytes = max(cols * itemsize, 1)
    max_rows = max(sublane, (budget // row_bytes) // sublane * sublane)
    tile = min(max_rows, _round_up(rows, sublane))
    # Guarantee >= 2 grid steps so the 'parallel' axis can split across the
    # two TensorCores on v7x (and the pipeline actually double-buffers).
    if tile >= rows:
        tile = max(sublane, _round_up(pl.cdiv(rows, 2), sublane))
    return tile


def _temp_scale_kernel(temp_ref, x_ref, o_ref):
    # temp_ref lives in SMEM: a single f32 scalar temperature.
    inv_t = 1.0 / temp_ref[0]                              # scalar reciprocal
    # VPU elementwise multiply in f32, cast back to the output dtype so
    # bf16/fp16 logits are stored at their native width (HBM-BW bound op).
    o_ref[...] = (x_ref[...].astype(jnp.float32) * inv_t).astype(o_ref.dtype)


def temperature_scale(logits: jax.Array, temperature: jax.Array,
                      *, tile_rows: int | None = None) -> jax.Array:
    """logits: (B, C); temperature: (1,) -> (B, C), same dtype as logits."""
    assert logits.ndim == 2, "TemperatureScaling expects 2-D (batch, num_classes) logits"
    B, C = logits.shape
    dtype = logits.dtype
    itemsize = jnp.dtype(dtype).itemsize
    sublane = _sublane(dtype)
    budget, vmem_limit = _vmem_budget_bytes()

    # Present a lane-dense slab to the kernel whenever possible.
    if (B * C) % _LANE == 0:
        rows, cols = (B * C) // _LANE, _LANE
        x = logits.reshape(rows, cols)        # wrapper-side layout plumbing
    else:
        rows, cols = B, C                     # full last dim is a legal block
        x = logits

    if tile_rows is None:
        tile_rows = _pick_tile_rows(rows, cols, itemsize, sublane, budget)
    else:
        tile_rows = min(tile_rows, rows)
        if tile_rows != rows and tile_rows % sublane != 0:
            raise ValueError(
                f"tile_rows={tile_rows} must be a multiple of {sublane} "
                f"(sublane count for {dtype}) or >= rows={rows}")

    grid = (pl.cdiv(rows, tile_rows),)        # ragged last block is masked

    # Make sure the explicit limit always covers the actual working set.
    tile_bytes = tile_rows * cols * itemsize
    vmem_limit = int(max(vmem_limit, 4 * tile_bytes + 2 * _MIB))

    temp = temperature.reshape(-1).astype(jnp.float32)

    cost = pl.CostEstimate(
        flops=rows * cols,
        transcendentals=0,
        bytes_accessed=2 * rows * cols * itemsize + 4,
    )

    out = pl.pallas_call(
        _temp_scale_kernel,
        out_shape=jax.ShapeDtypeStruct((rows, cols), dtype),
        grid=grid,
        in_specs=[
            pl.BlockSpec(memory_space=pltpu.MemorySpace.SMEM),   # temperature
            pl.BlockSpec((tile_rows, cols), lambda i: (i, 0)),   # logits tile
        ],
        out_specs=pl.BlockSpec((tile_rows, cols), lambda i: (i, 0)),
        compiler_params=pltpu.CompilerParams(
            dimension_semantics=("parallel",),                   # megacore split
            vmem_limit_bytes=vmem_limit),
        cost_estimate=cost,
    )(temp, x)

    return out.reshape(B, C)


class TemperatureScaling:
    """JAX port of the PyTorch module (forward pass only)."""

    def __init__(self):
        # nn.Parameter(torch.ones(1)) -> deterministic init of ones, shape (1,)
        self.temperature = jnp.ones((1,), dtype=jnp.float32)

    def __call__(self, logits: jax.Array) -> jax.Array:
        return temperature_scale(logits, self.temperature)


if __name__ == "__main__":
    key = jax.random.PRNGKey(0)
    k1, k2, k3, k4 = jax.random.split(key, 4)

    model = TemperatureScaling()
    model.temperature = jnp.array([1.7], dtype=jnp.float32)
    t = float(model.temperature[0])

    # Case 1: lane-dense (B*C % 128 == 0) f32 -> flattened streaming path.
    logits1 = jax.random.normal(k1, (8, 128), dtype=jnp.float32)
    out1 = jax.block_until_ready(model(logits1))
    ref1 = logits1 / t
    assert out1.shape == logits1.shape and out1.dtype == logits1.dtype
    assert jnp.allclose(out1, ref1, atol=1e-6, rtol=1e-6)

    # Case 2: C not a multiple of 128 but B*C is -> lane-dense flatten path.
    logits2 = jax.random.normal(k2, (16, 96), dtype=jnp.float32)
    out2 = jax.block_until_ready(model(logits2))
    ref2 = logits2 / t
    assert out2.shape == logits2.shape and out2.dtype == logits2.dtype
    assert jnp.allclose(out2, ref2, atol=1e-6, rtol=1e-6)

    # Case 3: odd shape + bf16 I/O -> unflattened path, full-dim block, bf16 stores.
    logits3 = jax.random.normal(k3, (6, 100), dtype=jnp.bfloat16)
    out3 = jax.block_until_ready(model(logits3))
    ref3 = (logits3.astype(jnp.float32) / t).astype(jnp.bfloat16)
    assert out3.shape == logits3.shape and out3.dtype == logits3.dtype
    assert jnp.allclose(out3.astype(jnp.float32), ref3.astype(jnp.float32),
                        atol=1e-2, rtol=1e-2)

    # Case 4: unaligned lanes + non-divisible rows -> cdiv grid, ragged last
    # block, masked lane-edge stores, >= 2 grid steps.
    logits4 = jax.random.normal(k4, (264, 257), dtype=jnp.float32)
    out4 = jax.block_until_ready(model(logits4))
    ref4 = logits4 / t
    assert out4.shape == logits4.shape and out4.dtype == logits4.dtype
    assert jnp.allclose(out4, ref4, atol=1e-6, rtol=1e-6)

    print("KERNEL_OK")
</pallas_src>

<mosaic_0001>
module attributes {stable_mosaic.version = 11 : i64} {
  func.func @_temp_scale_kernel(%arg0: i32, %arg1: memref<1xf32, #tpu.memory_space<smem>>, %arg2: memref<8x128xf32, #tpu.memory_space<vmem>>, %arg3: memref<8x128xf32, #tpu.memory_space<vmem>>) attributes {dimension_semantics = [#tpu.dimension_semantics<parallel>], iteration_bounds = array<i64: 1>, scalar_prefetch = 0 : i64, scratch_operands = 0 : i64, tpu.core_type = #tpu.core_type<tc>, window_params = [{transform_indices = @transform_0, window_bounds = array<i64: 1>}, {transform_indices = @transform_1, window_bounds = array<i64: 8, 128>}, {transform_indices = @transform_2, window_bounds = array<i64: 8, 128>}]} {
    %c0 = arith.constant 0 : index
    %0 = memref.load %arg1[%c0] : memref<1xf32, #tpu.memory_space<smem>>
    %cst = arith.constant 1.000000e+00 : f32
    %1 = arith.divf %cst, %0 : f32
    %c0_0 = arith.constant 0 : index
    %c0_1 = arith.constant 0 : index
    %2 = vector.load %arg2[%c0_0, %c0_1] : memref<8x128xf32, #tpu.memory_space<vmem>>, vector<8x128xf32>
    %3 = vector.broadcast %1 : f32 to vector<8x128xf32>
    %4 = arith.mulf %2, %3 : vector<8x128xf32>
    %c0_2 = arith.constant 0 : index
    %c0_3 = arith.constant 0 : index
    %5 = vector.load %arg3[%c0_2, %c0_3] : memref<8x128xf32, #tpu.memory_space<vmem>>, vector<8x128xf32>
    tpu.vector_store %arg3[%c0_2, %c0_3], %4 {strides = array<i32>} : memref<8x128xf32, #tpu.memory_space<vmem>>, vector<8x128xf32>,
    return
  }
  func.func @transform_0(%arg0: i32) -> i32 {
    %c0_i32 = arith.constant 0 : i32
    %c0_i32_0 = arith.constant 0 : i32
    return %c0_i32 : i32
  }
  func.func @transform_1(%arg0: i32) -> (i32, i32) {
    %c0_i32 = arith.constant 0 : i32
    %c0_i32_0 = arith.constant 0 : i32
    return %arg0, %c0_i32 : i32, i32
  }
  func.func @transform_2(%arg0: i32) -> (i32, i32) {
    %c0_i32 = arith.constant 0 : i32
    %c0_i32_0 = arith.constant 0 : i32
    return %arg0, %c0_i32 : i32, i32
  }
}

</mosaic_0001>

<bundles_post_ra>
// kernel: tpu_custom_call.1
= control target key start
LH: loop header
LB: loop body
LE: loop exit
PB: predicated region body
PF: predicated region fallthrough
CT: control target
= control target key end

     0   :  { %8 = vsyncpa [#allocation4], 0  ;;  %s146_s0 = inlined_call_operand.<no memory space> [shape: f32[1], index: 0, kind: input, shape index: {}]   ;;  %s147_s1 = inlined_call_operand.hbm [shape: f32[8,128], index: 1, kind: input, shape index: {}]   ;;  %s148_s2 = inlined_call_operand.hbm [shape: f32[8,128], index: 2, kind: output, shape index: {}]  }
   0x1   :  { %9 = vsyncpa [#allocation5], 0  ;;  %s102_s9 = smov [#allocation3]   ;;  %s54_s13 = scalar_lea.hbm %s147_s1, 128 }
   0x2   :  { %s18_s10 = sshll.u32 %s102_s9, 4  ;;  %p55_p0 = scmp.ne.s32.totalorder %s147_s1, %s54_s13  ;;  %s19_s10 = int_to_ptr.vmem [resolvable:$true] %s18_s10 }
   0x3   :  { %p58_p1 = scmp.lt.u32.totalorder %s54_s13, %s147_s1 }
   0x5   :  { %p60_p2 = pnand %p58_p1, %p55_p0 }
   0x7   :  { %63 = shalt.err (!%p60_p2)
}
   0x8   :  { %s64_s18 = scalar_lea.vmem %s19_s10, 128  ;;  %p69_p4 = scmp.lt.s32.totalorder %s19_s10, %s19_s10 }
   0x9   :  { %p65_p3 = scmp.ne.s32.totalorder %s19_s10, %s64_s18  ;;  %p70_p5 = scmp.lt.s32.totalorder %s64_s18, %s64_s18 }
   0xb   :  { %p71_p6 = por %p70_p5, %p69_p4 }
   0xd   :  { %p72_p7 = pnand %p71_p6, %p65_p3 }
   0xf   :  { %75 = shalt.err (!%p72_p7)
}
  0x10   :  { %21 = dma.hbm_to_vmem [thread:$0]  %s147_s1, 128, %s19_s10, [#allocation4]   ;;  %v26_v0 = vstv %s146_s0 }
  0x11   :  { %98 = dma.done.wait [#allocation4], 128  }
  0x12   :  { %99 = vsyncadd [#allocation4], 4294967168  ;;  %52 = vrcp.f32 %v26_v0  ;;  %v29_v2 = vld [vmem:[#allocation3] sm:$0xff]  ;;  %s103_s23 = smov [#allocation6]  }
  0x13   :  { %s39_s24 = sshll.u32 %s103_s23, 4  ;;  %s40_s24 = int_to_ptr.vmem [resolvable:$true] %s39_s24 }
  0x14   :  { %s76_s26 = scalar_lea.vmem %s40_s24, 128  ;;  %p81_p9 = scmp.lt.s32.totalorder %s40_s24, %s40_s24 }
  0x15   :  { %p77_p8 = scmp.ne.s32.totalorder %s40_s24, %s76_s26  ;;  %p82_p10 = scmp.lt.s32.totalorder %s76_s26, %s76_s26 }
  0x17   :  { %p83_p11 = por %p82_p10, %p81_p9 }
  0x19   :  { %p84_p12 = pnand %p83_p11, %p77_p8 }
  0x1c   :  { %v53_v1 = vpop.eup %52 }
  0x1d   :  { %48 = vpush %v53_v1 }
  0x4e   :  { %s49_s25 = spop %48 }
  0x4f   :  { %v30_v3 = vstv %s49_s25 }
  0x50   :  { %v31_v4 = vmul.f32 %v30_v3, %v29_v2 }
  0x52   :  { %32 = vst [vmem:[#allocation6] sm:$0xff] %v31_v4 }
  0x53   :  { %87 = shalt.err (!%p84_p12)
}
  0x54   :  { %s88_s27 = scalar_lea.hbm %s148_s2, 128 }
  0x55   :  { %p89_p13 = scmp.ne.s32.totalorder %s148_s2, %s88_s27  ;;  %p92_p0 = scmp.lt.u32.totalorder %s88_s27, %s148_s2 }
  0x57   :  { %p94_p1 = pnand %p92_p0, %p89_p13 }
  0x59   :  { %97 = shalt.err (!%p94_p1)
}
  0x5a   :  { %42 = dma.vmem_to_hbm [thread:$0]  %s40_s24, 128, %s148_s2, [#allocation5]  }
  0x5b   :  { %100 = dma.done.wait [#allocation5], 128  }
  0x5c   :  { %101 = vsyncadd [#allocation5], 4294967168 }
  0x5d   :  { %46 = vsyncpa [#allocation4], 1 }
  0x5e   :  { %47 = vsyncpa [#allocation5], 1 }

</bundles_post_ra>
